<compile_context>
chip_gen: v6e
topology: v6e:2x2x1
jax: 0.10.0
libtpu: 0.0.40
codegen_flags: <defaults>
</compile_context>

<pallas_src>
import functools

import jax
import jax.numpy as jnp
from jax.experimental import pallas as pl
from jax.experimental.pallas import tpu as pltpu


def _dws_conv1d_kernel(x_ref, dw_w_ref, dw_b_ref, pw_w_ref, pw_b_ref, out_ref,
                       xpad_ref, *, K, padding, L_out):
    # x_ref:    (1, C_in, L)        one batch element (NCL tile)
    # dw_w_ref: (C_in, K)           depthwise taps (per channel)
    # dw_b_ref: (C_in, 1)
    # pw_w_ref: (C_out, C_in)       pointwise 1x1 conv weight
    # pw_b_ref: (C_out, 1)
    # out_ref:  (1, C_out, L_out)
    # xpad_ref: (C_in, L + 2*padding)  VMEM scratch holding the halo'd tile
    L = x_ref.shape[2]

    # Build the zero-padded tile in VMEM (no HBM padding copy).
    if padding > 0:
        xpad_ref[...] = jnp.zeros_like(xpad_ref)
    xpad_ref[:, padding:padding + L] = x_ref[0].astype(jnp.float32)

    # --- Depthwise conv: acc[c, l] = sum_k w[c, k] * xpad[c, l + k] ---------
    dw_w = dw_w_ref[...].astype(jnp.float32)          # hoisted out of the loop
    acc = xpad_ref[:, 0:L_out] * dw_w[:, 0:1]          # init with tap 0
    for k in range(1, K):                              # K is small & static
        acc = acc + xpad_ref[:, k:k + L_out] * dw_w[:, k:k + 1]
    acc = acc + dw_b_ref[...].astype(jnp.float32)      # (C_in, 1) broadcast

    # --- Pointwise 1x1 conv: channel contraction on the MXU -----------------
    y = jnp.dot(pw_w_ref[...].astype(jnp.float32), acc,
                preferred_element_type=jnp.float32)    # (C_out, L_out)
    y = y + pw_b_ref[...].astype(jnp.float32)

    out_ref[0] = y.astype(out_ref.dtype)


def depthwise_separable_conv1d(x_ncl, dw_w, dw_b, pw_w, pw_b, *,
                               kernel_size, padding):
    """DepthwiseSeparableConv1d forward. Input/output are PyTorch NCL."""
    N, C_in, L = x_ncl.shape
    C_out = pw_w.shape[0]
    L_out = L + 2 * padding - (kernel_size - 1)
    assert L_out >= 1, "kernel larger than padded input"

    kern = functools.partial(_dws_conv1d_kernel, K=kernel_size,
                             padding=padding, L_out=L_out)

    flops = 2 * N * L_out * C_in * (kernel_size + C_out)
    bytes_accessed = 4 * (x_ncl.size + N * C_out * L_out + dw_w.size
                          + dw_b.size + pw_w.size + pw_b.size)
    cost = pl.CostEstimate(flops=flops, transcendentals=0,
                           bytes_accessed=bytes_accessed)

    grid_spec = pltpu.PrefetchScalarGridSpec(
        num_scalar_prefetch=0,
        grid=(N,),
        in_specs=[
            pl.BlockSpec((1, C_in, L), lambda n: (n, 0, 0)),        # x tile
            pl.BlockSpec((C_in, kernel_size), lambda n: (0, 0)),    # dw weight
            pl.BlockSpec((C_in, 1), lambda n: (0, 0)),              # dw bias
            pl.BlockSpec((C_out, C_in), lambda n: (0, 0)),          # pw weight
            pl.BlockSpec((C_out, 1), lambda n: (0, 0)),             # pw bias
        ],
        out_specs=pl.BlockSpec((1, C_out, L_out), lambda n: (n, 0, 0)),
        scratch_shapes=[
            pltpu.VMEM((C_in, L + 2 * padding), jnp.float32),       # halo'd tile
        ],
    )

    return pl.pallas_call(
        kern,
        out_shape=jax.ShapeDtypeStruct((N, C_out, L_out), jnp.float32),
        grid_spec=grid_spec,
        compiler_params=pltpu.CompilerParams(
            dimension_semantics=("parallel",),
            vmem_limit_bytes=32 * 1024 * 1024,
        ),
        cost_estimate=cost,
    )(x_ncl, dw_w, dw_b, pw_w, pw_b)


def init_dws_conv1d_params(key, in_channels, out_channels, kernel_size):
    """Deterministic init matching the PyTorch module's parameter shapes."""
    k0, k1, k2, k3 = jax.random.split(key, 4)
    # PyTorch Conv1d default: U(-sqrt(1/fan_in), sqrt(1/fan_in))
    dw_bound = 1.0 / (1 * kernel_size) ** 0.5     # groups=C_in -> fan_in = K
    pw_bound = 1.0 / float(in_channels) ** 0.5    # 1x1 conv  -> fan_in = C_in
    dw_w = jax.random.uniform(k0, (in_channels, kernel_size), jnp.float32,
                              -dw_bound, dw_bound)       # (C,1,K) -> (C,K)
    dw_b = jax.random.uniform(k1, (in_channels, 1), jnp.float32,
                              -dw_bound, dw_bound)
    pw_w = jax.random.uniform(k2, (out_channels, in_channels), jnp.float32,
                              -pw_bound, pw_bound)       # (Co,Ci,1) -> (Co,Ci)
    pw_b = jax.random.uniform(k3, (out_channels, 1), jnp.float32,
                              -pw_bound, pw_bound)
    return dw_w, dw_b, pw_w, pw_b


def _reference(x_ncl, dw_w, dw_b, pw_w, pw_b, padding):
    """Pure-JAX reference with the same PyTorch semantics."""
    C_in, K = dw_w.shape
    y = jax.lax.conv_general_dilated(
        x_ncl, dw_w.reshape(C_in, 1, K),
        window_strides=(1,), padding=[(padding, padding)],
        feature_group_count=C_in,
        dimension_numbers=("NCH", "OIH", "NCH"))
    y = y + dw_b.reshape(1, C_in, 1)
    return jnp.einsum("oc,ncl->nol", pw_w, y) + pw_b.reshape(1, -1, 1)


if __name__ == "__main__":
    N, C_IN, C_OUT, L, K, PAD = 2, 4, 8, 16, 3, 1

    key = jax.random.PRNGKey(0)
    key, xkey, pkey = jax.random.split(key, 3)
    x = jax.random.normal(xkey, (N, C_IN, L), jnp.float32)   # PyTorch NCL input
    dw_w, dw_b, pw_w, pw_b = init_dws_conv1d_params(pkey, C_IN, C_OUT, K)

    out = depthwise_separable_conv1d(x, dw_w, dw_b, pw_w, pw_b,
                                     kernel_size=K, padding=PAD)
    out = jax.block_until_ready(out)

    L_OUT = L + 2 * PAD - (K - 1)
    ref = _reference(x, dw_w, dw_b, pw_w, pw_b, PAD)

    assert out.shape == (N, C_OUT, L_OUT), out.shape
    assert out.dtype == jnp.float32
    assert bool(jnp.all(jnp.isfinite(out)))
    assert bool(jnp.allclose(out, ref, rtol=1e-4, atol=1e-4)), \
        float(jnp.max(jnp.abs(out - ref)))
    print("KERNEL_OK")
</pallas_src>

<mosaic_0001>
module attributes {stable_mosaic.version = 11 : i64} {
  func.func @_dws_conv1d_kernel(%arg0: i32, %arg1: memref<1x4x16xf32, #tpu.memory_space<vmem>>, %arg2: memref<4x3xf32, #tpu.memory_space<vmem>>, %arg3: memref<4x1xf32, #tpu.memory_space<vmem>>, %arg4: memref<8x4xf32, #tpu.memory_space<vmem>>, %arg5: memref<8x1xf32, #tpu.memory_space<vmem>>, %arg6: memref<1x8x16xf32, #tpu.memory_space<vmem>>, %arg7: memref<4x18xf32, #tpu.memory_space<vmem>>) attributes {dimension_semantics = [#tpu.dimension_semantics<parallel>], iteration_bounds = array<i64: 2>, scalar_prefetch = 0 : i64, scratch_operands = 1 : i64, tpu.core_type = #tpu.core_type<tc>, window_params = [{transform_indices = @transform_0, window_bounds = array<i64: 1, 4, 16>}, {pipeline_mode = #tpu.pipeline_mode<synchronous>, transform_indices = @transform_1, window_bounds = array<i64: 4, 3>}, {pipeline_mode = #tpu.pipeline_mode<synchronous>, transform_indices = @transform_2, window_bounds = array<i64: 4, 1>}, {pipeline_mode = #tpu.pipeline_mode<synchronous>, transform_indices = @transform_3, window_bounds = array<i64: 8, 4>}, {pipeline_mode = #tpu.pipeline_mode<synchronous>, transform_indices = @transform_4, window_bounds = array<i64: 8, 1>}, {transform_indices = @transform_5, window_bounds = array<i64: 1, 8, 16>}]} {
    %cst = arith.constant 0.000000e+00 : f32
    %0 = vector.broadcast %cst : f32 to vector<4x18xf32>
    %c0 = arith.constant 0 : index
    %c0_0 = arith.constant 0 : index
    %1 = vector.load %arg7[%c0, %c0_0] : memref<4x18xf32, #tpu.memory_space<vmem>>, vector<4x18xf32>
    tpu.vector_store %arg7[%c0, %c0_0], %0 {strides = array<i32>} : memref<4x18xf32, #tpu.memory_space<vmem>>, vector<4x18xf32>,
    %c0_1 = arith.constant 0 : index
    %c0_2 = arith.constant 0 : index
    %c0_3 = arith.constant 0 : index
    %2 = vector.load %arg1[%c0_1, %c0_2, %c0_3] : memref<1x4x16xf32, #tpu.memory_space<vmem>>, vector<1x4x16xf32>
    %3 = vector.shape_cast %2 : vector<1x4x16xf32> to vector<4x16xf32>
    %c0_4 = arith.constant 0 : index
    %c1 = arith.constant 1 : index
    %4 = vector.load %arg7[%c0_4, %c1] : memref<4x18xf32, #tpu.memory_space<vmem>>, vector<4x16xf32>
    tpu.vector_store %arg7[%c0_4, %c1], %3 {strides = array<i32>} : memref<4x18xf32, #tpu.memory_space<vmem>>, vector<4x16xf32>,
    %c0_5 = arith.constant 0 : index
    %c0_6 = arith.constant 0 : index
    %5 = vector.load %arg2[%c0_5, %c0_6] : memref<4x3xf32, #tpu.memory_space<vmem>>, vector<4x3xf32>
    %c0_7 = arith.constant 0 : index
    %c0_8 = arith.constant 0 : index
    %6 = vector.load %arg7[%c0_7, %c0_8] : memref<4x18xf32, #tpu.memory_space<vmem>>, vector<4x16xf32>
    %7 = vector.extract_strided_slice %5 {offsets = [0, 0], sizes = [4, 1], strides = [1, 1]} : vector<4x3xf32> to vector<4x1xf32>
    %8 = vector.broadcast %7 : vector<4x1xf32> to vector<4x16xf32>
    %9 = arith.mulf %6, %8 : vector<4x16xf32>
    %c0_9 = arith.constant 0 : index
    %c1_10 = arith.constant 1 : index
    %10 = vector.load %arg7[%c0_9, %c1_10] : memref<4x18xf32, #tpu.memory_space<vmem>>, vector<4x16xf32>
    %11 = vector.extract_strided_slice %5 {offsets = [0, 1], sizes = [4, 1], strides = [1, 1]} : vector<4x3xf32> to vector<4x1xf32>
    %12 = vector.broadcast %11 : vector<4x1xf32> to vector<4x16xf32>
    %13 = arith.mulf %10, %12 : vector<4x16xf32>
    %14 = arith.addf %9, %13 : vector<4x16xf32>
    %c0_11 = arith.constant 0 : index
    %c2 = arith.constant 2 : index
    %15 = vector.load %arg7[%c0_11, %c2] : memref<4x18xf32, #tpu.memory_space<vmem>>, vector<4x16xf32>
    %16 = vector.extract_strided_slice %5 {offsets = [0, 2], sizes = [4, 1], strides = [1, 1]} : vector<4x3xf32> to vector<4x1xf32>
    %17 = vector.broadcast %16 : vector<4x1xf32> to vector<4x16xf32>
    %18 = arith.mulf %15, %17 : vector<4x16xf32>
    %19 = arith.addf %14, %18 : vector<4x16xf32>
    %c0_12 = arith.constant 0 : index
    %c0_13 = arith.constant 0 : index
    %20 = vector.load %arg3[%c0_12, %c0_13] : memref<4x1xf32, #tpu.memory_space<vmem>>, vector<4x1xf32>
    %21 = vector.broadcast %20 : vector<4x1xf32> to vector<4x16xf32>
    %22 = arith.addf %19, %21 : vector<4x16xf32>
    %c0_14 = arith.constant 0 : index
    %c0_15 = arith.constant 0 : index
    %23 = vector.load %arg4[%c0_14, %c0_15] : memref<8x4xf32, #tpu.memory_space<vmem>>, vector<8x4xf32>
    %cst_16 = arith.constant dense<0.000000e+00> : vector<8x16xf32>
    %24 = tpu.matmul %23, %22, %cst_16 {dimension_numbers = #tpu.dot_dimension_numbers<[1], [0], [0], [1], [0, 0, 1, 1], [], []>} : vector<8x4xf32>, vector<4x16xf32>, vector<8x16xf32> -> vector<8x16xf32>
    %c0_17 = arith.constant 0 : index
    %c0_18 = arith.constant 0 : index
    %25 = vector.load %arg5[%c0_17, %c0_18] : memref<8x1xf32, #tpu.memory_space<vmem>>, vector<8x1xf32>
    %26 = vector.broadcast %25 : vector<8x1xf32> to vector<8x16xf32>
    %27 = arith.addf %24, %26 : vector<8x16xf32>
    %c0_19 = arith.constant 0 : index
    %c0_20 = arith.constant 0 : index
    %c0_21 = arith.constant 0 : index
    %28 = vector.load %arg6[%c0_19, %c0_20, %c0_21] : memref<1x8x16xf32, #tpu.memory_space<vmem>>, vector<1x8x16xf32>
    %29 = vector.shape_cast %28 : vector<1x8x16xf32> to vector<8x16xf32>
    %30 = vector.shape_cast %27 : vector<8x16xf32> to vector<1x8x16xf32>
    tpu.vector_store %arg6[%c0_19, %c0_20, %c0_21], %30 {strides = array<i32>} : memref<1x8x16xf32, #tpu.memory_space<vmem>>, vector<1x8x16xf32>,
    return
  }
  func.func @transform_0(%arg0: i32) -> (i32, i32, i32) {
    %c0_i32 = arith.constant 0 : i32
    %c0_i32_0 = arith.constant 0 : i32
    %c0_i32_1 = arith.constant 0 : i32
    return %arg0, %c0_i32, %c0_i32_0 : i32, i32, i32
  }
  func.func @transform_1(%arg0: i32) -> (i32, i32) {
    %c0_i32 = arith.constant 0 : i32
    %c0_i32_0 = arith.constant 0 : i32
    %c0_i32_1 = arith.constant 0 : i32
    return %c0_i32, %c0_i32_0 : i32, i32
  }
  func.func @transform_2(%arg0: i32) -> (i32, i32) {
    %c0_i32 = arith.constant 0 : i32
    %c0_i32_0 = arith.constant 0 : i32
    %c0_i32_1 = arith.constant 0 : i32
    return %c0_i32, %c0_i32_0 : i32, i32
  }
  func.func @transform_3(%arg0: i32) -> (i32, i32) {
    %c0_i32 = arith.constant 0 : i32
    %c0_i32_0 = arith.constant 0 : i32
    %c0_i32_1 = arith.constant 0 : i32
    return %c0_i32, %c0_i32_0 : i32, i32
  }
  func.func @transform_4(%arg0: i32) -> (i32, i32) {
    %c0_i32 = arith.constant 0 : i32
    %c0_i32_0 = arith.constant 0 : i32
    %c0_i32_1 = arith.constant 0 : i32
    return %c0_i32, %c0_i32_0 : i32, i32
  }
  func.func @transform_5(%arg0: i32) -> (i32, i32, i32) {
    %c0_i32 = arith.constant 0 : i32
    %c0_i32_0 = arith.constant 0 : i32
    %c0_i32_1 = arith.constant 0 : i32
    return %arg0, %c0_i32, %c0_i32_0 : i32, i32, i32
  }
}

</mosaic_0001>

<bundles_post_ra>
// kernel: tpu_custom_call.1
= control target key start
LH: loop header
LB: loop body
LE: loop exit
PB: predicated region body
PF: predicated region fallthrough
CT: control target
= control target key end

     0   :  { %10 = vsyncpa [#allocation4], 0  ;;  %s700_s0 = inlined_call_operand.vmem [shape: f32[2,4,16], index: 0, kind: input, shape index: {}]   ;;  %s701_s1 = inlined_call_operand.vmem [shape: f32[4,3], index: 1, kind: input, shape index: {}]   ;;  %s702_s2 = inlined_call_operand.vmem [shape: f32[4,1], index: 2, kind: input, shape index: {}]   ;;  %s703_s3 = inlined_call_operand.vmem [shape: f32[8,4], index: 3, kind: input, shape index: {}]   ;;  %s704_s4 = inlined_call_operand.vmem [shape: f32[8,1], index: 4, kind: input, shape index: {}]   ;;  %s705_s5 = inlined_call_operand.hbm [shape: f32[2,8,16], index: 5, kind: output, shape index: {}]  }
   0x1   :  { %12 = vsyncpa [#allocation4 + $0x1], 0  ;;  %s595_s18 = smov 0   ;;  %s597_s19 = smov 0  }
   0x2   :  { %s599_s20 = smov 0   ;;  %s601_s21 = smov 0  }
   0x3 LB: > { %s616_s22 = sadd.s32 4294967295, %s554_s21   ;;  %s424_s23 = sadd.s32 4294967294, %s554_s21   ;;  %s554_s21 = sphi %s601_s21, %s711_s21   ;;  %s550_s20 = sphi %s599_s20, %s710_s20   ;;  %s546_s19 = sphi %s597_s19, %s709_s19   ;;  %s542_s18 = sphi %s595_s18, %s708_s18  }
   0x4   : > { %s620_s24 = sadd.s32 1, %s554_s21   ;;  %s135_s25 = sadd.s32 1, %s550_s20 }
   0x5   : > { %s132_s26 = ssub.s32 %s554_s21, %s620_s24  ;;  %p145_p0 = scmp.ne.s32.totalorder %s550_s20, %s546_s19 }
   0x6   : > { %p133_p1 = scmp.eq.s32.totalorder %s132_s26, 0  ;;  %p146_p2 = scmp.eq.s32.totalorder %s616_s22, 1 }
   0x7   : > { %p151_p3 = scmp.ne.s32.totalorder %s546_s19, %s542_s18  ;;  %p152_p4 = scmp.eq.s32.totalorder %s424_s23, 1 }
   0x8   : > { %s631_s27 = scalar_select %p133_p1, %s550_s20, %s135_s25  }
   0x9   : > { %p633_p5 = por %p146_p2, %p145_p0  ;;  %p637_p6 = por %p152_p4, %p151_p3 }
   0xa   : > { %p427_p7 = scmp.ge.s32.totalorder %s554_s21, 1  ;;  %p189_p8 = scmp.lt.s32.totalorder %s554_s21, 3 }
   0xc   : > { %p190_p9 = pnand %p427_p7, %p189_p8 }
   0xd   : > { %p216_p10 = scmp.lt.s32.totalorder (!%p190_p9), %s616_s22, 1  ;;  %s560_s12 = smov (!%p190_p9), 1  }
   0xe   : > { %193 = sbr.rel (%p190_p9) target bundleno = 484 (0x1e4), region = 40  ;;  %s562_s15 = smov (!%p190_p9), 126  }
   0xf   : > { %s563_s16 = smov (!%p190_p9), 127   ;;  %s213_s30 = sand.u32 (!%p190_p9), 1, %s546_s19  }
  0x10   : > { %s428_s6 = sshll.u32 (!%p190_p9), %s213_s30, 3  ;;  %s352_s13 = scalar_lea.sflag (!%p190_p9), [#allocation4], %s213_s30 }
  0x13   : > { %v229_v0 = vld [vmem:[%s701_s1] sm:$0xf]  ;;  %v556_v1 = vmov 2   ;;  %vm220_vm0 = vcmask 142336   ;;  %s217_s7 = scalar_select %p216_p10, %s616_s22, 1  ;;  %v557_v2 = vmov 1  }
  0x14   : > { %491 = vset.pattern.permute.xlu1 %v556_v1  ;;  %490 = vset.pattern.permute.xlu0 %v557_v2  ;;  %v558_v3 = vmov 0.0   ;;  %v559_v4 = vmov 0   ;;  %v257_v6 = vld [vmem:[%s702_s2] sm:$0xf]  ;;  %vm227_vm1 = vcmask 134152   ;;  %vm561_vm2 = vmmov 0  }
  0x15   : > { %248 = vperm.xlu1 %491, %v229_v0   ;;  %221 = vst.msk [vmem:[#allocation2] sm:$0xf] %vm220_vm0, %v558_v3  ;;  %438 = vmatprep.subr.mxu0 %v558_v3  ;;  %s429_s8 = sshll.u32 %s217_s7, 2  ;;  %v265_v13 = vld [vmem:[%s704_s4] sm:$0xff]  ;;  %vm275_vm3 = vcmask 1043456   ;;  %vm271_vm4 = vcmask 31744  }
  0x16   : > { %s219_s11 = scalar_lea.vmem %s700_s0, %s429_s8  ;;  %440 = vmatprep.mubr.msk.f32.mxu0 %vm561_vm2, %v558_v3  ;;  %v264_v22 = vld [vmem:[%s703_s3] sm:$0xff]  ;;  %s433_s7 = sshll.u32 %s616_s22, 7  ;;  %vm349_vm5 = vcmask 130048  }
  0x17   : > { %v222_v5 = vld [vmem:[%s219_s11] sm:$0xf]  ;;  %s215_s8 = scalar_lea.vmem [#allocation3], %s428_s6  ;;  %s564_s22 = smov [#allocation3]  }
  0x18   : > { %224 = vrot.lane.b32.xlu0 %v222_v5, %s560_s12  ;;  %s365_s9 = sshll.u32 %s215_s8, 4  ;;  %s665_s12 = scalar_lea.hbm %s705_s5, %s433_s7  ;;  %s366_s9 = int_to_ptr.vmem [resolvable:$true] %s365_s9 }
  0x19   : > { %492 = vset.pattern.permute.xlu1 %v559_v4  ;;  %s494_s14 = scalar_lea.vmem %s366_s9, 128 }
  0x1a   : > { %233 = vperm.xlu1 %492, %v229_v0   ;;  %p495_p11 = scmp.ne.s32.totalorder %s366_s9, %s494_s14 }
  0x1c   : > { %238 = vperm.xlu0 %490, %v229_v0   ;;  %p496_p12 = pnand %p495_p11, %p633_p5 }
  0x1e   : > { %260 = vperm.xlu1 %492, %v257_v6   ;;  %p497_p13 = pneg %p496_p12 }
  0x20   : > { %493 = vset.pattern.permute.xlu0 %v559_v4 }
  0x8a   : > { %v225_v7 = vpop.permute.xlu0 %224 }
  0x8b   : > { %228 = vst.msk [vmem:[#allocation2] sm:$0xf] %vm227_vm1, %v225_v7 }
  0x90   : > { %v249_v8 = vpop.permute.xlu1 %248 }
  0x92   : > { %v230_v9 = vld [vmem:[#allocation2] sm:$0xf] }
  0x93   : > { %v251_v10 = vmul.f32 %v249_v8, %v230_v9 }
  0x95   : > { %253 = vrot.lane.b32.xlu1 %v251_v10, %s562_s15  ;;  %v234_v14 = vpop.permute.xlu1 %233  ;;  %s498_s15 = sshll.u32 %s564_s22, 4  ;;  %s499_s15 = int_to_ptr.vmem [resolvable:$false] %s498_s15 }
  0x96   : > { %v236_v16 = vmul.f32 %v234_v14, %v230_v9  ;;  %p501_p0 = scmp.lt.s32.totalorder %s366_s9, %s499_s15 }
  0x97   : > { %v239_v11 = vpop.permute.xlu0 %238 }
  0x98   : > { %v241_v12 = vmul.f32 %v239_v11, %v230_v9 }
  0x99   : > { %v261_v15 = vpop.permute.xlu1 %260 }
  0x9a   : > { %243 = vrot.lane.b32.xlu0 %v241_v12, %s563_s16  ;;  %s500_s16 = scalar_lea.vmem %s499_s15, 256 }
  0x9b   : > { %p502_p1 = scmp.lt.s32.totalorder %s500_s16, %s494_s14 }
  0x9d   : > { %p503_p2 = por %p502_p1, %p501_p0 }
  0x9e   : > { %268 = vperm.xlu0 %493, %v265_v13  }
  0x9f   : > { %p504_p3 = pnand %p503_p2, %p497_p13 }
 0x107   : > { %v254_v19 = vpop.permute.xlu1 %253 }
 0x10c   : > { %v244_v17 = vpop.permute.xlu0 %243 }
 0x10d   : > { %v246_v18 = vadd.f32 %v244_v17, %v236_v16 }
 0x10f   : > { %v256_v20 = vadd.f32 %v254_v19, %v246_v18 }
 0x111   : > { %v263_v21 = vadd.f32 %v261_v15, %v256_v20 }
 0x113   : > { %439 = vmatpush3.msk.msra.mxu0 %vm275_vm3, %v263_v21 }
 0x114   : > { %441 = vmatmul.mubr.msk.f32.vlgmr.msra.gmra.mxu0 %vm271_vm4, %v264_v22 }
 0x119   : > { %v269_v23 = vpop.permute.xlu0 %268 }
 0x1d4   : > { %v345_v24 = vpop.f32.mrf.mxu0 }
 0x1d5   : > { %v346_v25 = vadd.f32 %v345_v24, %v269_v23 }
 0x1d6   : > { %v442_v26 = vpop.f32.mrf.mxu0 }
 0x1d7   : > { %350 = vst.msk [vmem:[%s215_s8] sm:$0xff] %vm349_vm5, %v346_v25 }
 0x1d8   : > { %507 = shalt.err (!%p504_p3)
}
 0x1d9   : > { %s508_s17 = scalar_lea.hbm %s665_s12, 128  ;;  %s512_s26 = scalar_lea.hbm %s705_s5, 256 }
 0x1da   : > { %p509_p4 = scmp.ne.s32.totalorder %s665_s12, %s508_s17  ;;  %p513_p9 = scmp.lt.s32.totalorder %s665_s12, %s705_s5 }
 0x1db   : > { %p514_p10 = scmp.lt.s32.totalorder %s512_s26, %s508_s17 }
 0x1dc   : > { %p510_p7 = pnand %p509_p4, %p633_p5 }
 0x1dd   : > { %p515_p11 = por %p514_p10, %p513_p9 }
 0x1de   : > { %p511_p8 = pneg %p510_p7 }
 0x1e0   : > { %p516_p12 = pnand %p515_p11, %p511_p8 }
 0x1e2   : > { %519 = shalt.err (!%p516_p12)
}
 0x1e3   : > { %443 = dma.vmem_to_hbm [thread:$0]  (%p633_p5), %s366_s9, 128, %s665_s12, %s352_s13  }
 0x1e4 PF: > { %p449_p13 = scmp.ge.s32.totalorder %s554_s21, 2  ;;  %s377_s7 = sand.u32 1, %s542_s18  }
 0x1e5   : > { %s378_s8 = scalar_lea.sflag [#allocation4], %s377_s7 }
 0x1e6   : > { %p446_p0 = pnand %p449_p13, %p637_p6 }
 0x1e8   : > { %p447_p1 = pneg %p446_p0 }
 0x1ea   : > { %537 = dma.done.wait (%p447_p1), %s378_s8, 128  }
 0x1eb   : > { %539 = vsyncadd (%p447_p1), %s378_s8, 4294967168  ;;  %p15_p2 = scmp.ge.s32.totalorder %s620_s24, 4   ;;  %s708_s18 = smov %s546_s19 }
 0x1ec   : > { %s709_s19 = smov %s550_s20  ;;  %s710_s20 = smov %s631_s27 }
 0x1ed   : > { %s711_s21 = smov %s620_s24  ;;  %17 = sbr.rel (!%p15_p2) target bundleno = 3 (0x3), region = 75 }
 0x1f2   :  { %383 = vsyncpa [#allocation4], 1 }
 0x1f3   :  { %385 = vsyncpa [#allocation4 + $0x1], 1 }

</bundles_post_ra>
